<compile_context>
chip_gen: v5e
topology: v5e:2x2
jax: 0.10.0
libtpu: 0.0.40
codegen_flags: <defaults>
</compile_context>

<pallas_src>
import jax
import jax.numpy as jnp
from jax.experimental import pallas as pl
from jax.experimental.pallas import tpu as pltpu


H1 = 400          # logical hidden width 1 (PyTorch)
H2 = 200          # logical hidden width 2 (PyTorch)
H1P = 512         # lane-padded hidden width 1
H2P = 256         # lane-padded hidden width 2
MAX_TB = 256      # batch tile (multiple of 8; safe for v7x's 64 MiB VMEM)


def _critic_kernel(k_ref, s_ref, a_ref, w1_ref, b1_ref, w2s_ref, w2a_ref,
                   b2_ref, w3_ref, b3_ref, o_ref):
    s = s_ref[...]                      # (TB, d)
    a = a_ref[...]                      # (TB, m)
    d = s.shape[1]
    m = a.shape[1]

    # --- layer 1: Linear(d, 400) + ReLU ---
    # contraction depth d (=8) is far too shallow for the MXU -> unrolled VPU
    # broadcast multiply-accumulate.
    h1 = s[:, 0:1] * w1_ref[0:1, :]                         # (TB, H1P)
    for k in range(1, d):
        h1 = h1 + s[:, k:k + 1] * w1_ref[k:k + 1, :]
    h1 = jnp.maximum(h1 + b1_ref[...], 0.0)

    # --- layer 2: Linear(400 + m, 200) on cat([h1, a]) + ReLU ---
    # cat([h1, a]) @ W2 == h1 @ W2[:400]  (MXU)  +  a @ W2[400:]  (VPU, m=2)
    h2 = jnp.dot(h1, w2s_ref[...], preferred_element_type=jnp.float32)
    h2 = h2 + b2_ref[...]
    for k in range(m):
        h2 = h2 + a[:, k:k + 1] * w2a_ref[k:k + 1, :]
    h2 = jnp.maximum(h2, 0.0)

    # --- output layer: Linear(200, 1) as VPU mul + lane reduce, then K*tanh ---
    out = jnp.sum(h2 * w3_ref[...], axis=-1, keepdims=True) + b3_ref[...]
    o_ref[...] = k_ref[0, 0] * jnp.tanh(out)


def critic_forward(s, a, kparams, K):
    """s: (B, d) f32, a: (B, m) f32, kparams from prepare_params -> (B, 1)."""
    B, d = s.shape
    m = a.shape[1]
    w1, b1, w2s, w2a, b2, w3, b3 = kparams

    TB = B if B <= MAX_TB else MAX_TB
    grid = (pl.cdiv(B, TB),)

    k_arr = jnp.full((1, 1), K, jnp.float32)

    # batch-tiled operands pipeline over the grid; weights map to block (0,0)
    # on every step so Pallas keeps them resident in VMEM (no re-DMA).
    batched = lambda feat: pl.BlockSpec((TB, feat), lambda i: (i, 0))
    resident = lambda r, c: pl.BlockSpec((r, c), lambda i: (0, 0))

    flops = 2 * B * (d * H1 + (H1 + m) * H2 + H2)
    bytes_accessed = (sum(int(x.size) for x in kparams) + B * (d + m + 1)) * 4
    cost = pl.CostEstimate(flops=flops, transcendentals=B,
                           bytes_accessed=bytes_accessed)

    return pl.pallas_call(
        _critic_kernel,
        out_shape=jax.ShapeDtypeStruct((B, 1), jnp.float32),
        grid=grid,
        in_specs=[
            pl.BlockSpec(memory_space=pltpu.MemorySpace.SMEM),   # K scalar
            batched(d),                                          # s
            batched(m),                                          # a
            resident(d, H1P),                                    # w1
            resident(1, H1P),                                    # b1
            resident(H1P, H2P),                                  # w2 (state rows)
            resident(m, H2P),                                    # w2 (action rows)
            resident(1, H2P),                                    # b2
            resident(1, H2P),                                    # w3 (row vector)
            resident(1, 1),                                      # b3
        ],
        out_specs=batched(1),
        compiler_params=pltpu.CompilerParams(
            dimension_semantics=("parallel",)),
        cost_estimate=cost,
    )(k_arr, s, a, w1, b1, w2s, w2a, b2, w3, b3)


def init_params(key, d, m):
    """PyTorch-style parameters (nn.Linear default U[-1/sqrt(fan_in), ...])."""
    ks = jax.random.split(key, 6)

    def uniform(k, shape, fan_in):
        bound = 1.0 / float(fan_in) ** 0.5
        return jax.random.uniform(k, shape, jnp.float32, -bound, bound)

    W1 = uniform(ks[0], (H1, d), d)             # (400, d)
    b1 = uniform(ks[1], (H1,), d)               # (400,)
    W2 = uniform(ks[2], (H2, H1 + m), H1 + m)   # (200, 400+m)
    b2 = uniform(ks[3], (H2,), H1 + m)          # (200,)
    W3 = uniform(ks[4], (1, H2), H2)            # (1, 200)
    b3 = uniform(ks[5], (1,), H2)               # (1,)
    return (W1, b1, W2, b2, W3, b3)


def prepare_params(params, m):
    """Transpose to (in, out), split W2 into state/action parts, zero-pad
    hidden widths to lane multiples (400->512, 200->256). Math is unchanged."""
    W1, b1, W2, b2, W3, b3 = params
    d = W1.shape[1]

    w1 = jnp.zeros((d, H1P), jnp.float32).at[:, :H1].set(W1.T)
    b1p = jnp.zeros((1, H1P), jnp.float32).at[:, :H1].set(b1[None, :])

    w2 = W2.T                                              # (400+m, 200)
    w2s = jnp.zeros((H1P, H2P), jnp.float32).at[:H1, :H2].set(w2[:H1])
    w2a = jnp.zeros((m, H2P), jnp.float32).at[:, :H2].set(w2[H1:])
    b2p = jnp.zeros((1, H2P), jnp.float32).at[:, :H2].set(b2[None, :])

    w3 = jnp.zeros((1, H2P), jnp.float32).at[:, :H2].set(W3)
    b3p = b3.reshape(1, 1).astype(jnp.float32)
    return (w1, b1p, w2s, w2a, b2p, w3, b3p)


def reference_forward(s, a, params, K):
    """Pure-JAX replica of the PyTorch forward for a correctness check."""
    W1, b1, W2, b2, W3, b3 = params
    hi = jax.lax.Precision.HIGHEST
    h1 = jnp.maximum(jnp.dot(s, W1.T, precision=hi) + b1, 0.0)
    hid = jnp.concatenate([h1, a], axis=1)
    h2 = jnp.maximum(jnp.dot(hid, W2.T, precision=hi) + b2, 0.0)
    out = jnp.dot(h2, W3.T, precision=hi) + b3
    return K * jnp.tanh(out)


if __name__ == "__main__":
    # LunarLanderContinuous-v2: state dim d=8, action dim m=2
    d, m, K = 8, 2, 100.0
    B = 2  # small batch

    key = jax.random.PRNGKey(0)
    kp, ks, ka = jax.random.split(key, 3)

    params = init_params(kp, d, m)
    kparams = prepare_params(params, m)
    s = jax.random.normal(ks, (B, d), jnp.float32)
    a = jax.random.normal(ka, (B, m), jnp.float32)

    q = critic_forward(s, a, kparams, K)
    q = jax.block_until_ready(q)

    q_ref = reference_forward(s, a, params, K)
    assert q.shape == (B, 1)
    assert jnp.allclose(q, q_ref, atol=1e-3, rtol=1e-3), (q, q_ref)

    print("KERNEL_OK")
</pallas_src>

<mosaic_0001>
module attributes {stable_mosaic.version = 11 : i64} {
  func.func @_critic_kernel(%arg0: i32, %arg1: memref<1x1xf32, #tpu.memory_space<smem>>, %arg2: memref<2x8xf32, #tpu.memory_space<vmem>>, %arg3: memref<2x2xf32, #tpu.memory_space<vmem>>, %arg4: memref<8x512xf32, #tpu.memory_space<vmem>>, %arg5: memref<1x512xf32, #tpu.memory_space<vmem>>, %arg6: memref<512x256xf32, #tpu.memory_space<vmem>>, %arg7: memref<2x256xf32, #tpu.memory_space<vmem>>, %arg8: memref<1x256xf32, #tpu.memory_space<vmem>>, %arg9: memref<1x256xf32, #tpu.memory_space<vmem>>, %arg10: memref<1x1xf32, #tpu.memory_space<vmem>>, %arg11: memref<2x1xf32, #tpu.memory_space<vmem>>) attributes {dimension_semantics = [#tpu.dimension_semantics<parallel>], iteration_bounds = array<i64: 1>, scalar_prefetch = 0 : i64, scratch_operands = 0 : i64, tpu.core_type = #tpu.core_type<tc>, window_params = [{transform_indices = @transform_0, window_bounds = array<i64: 1, 1>}, {transform_indices = @transform_1, window_bounds = array<i64: 2, 8>}, {transform_indices = @transform_2, window_bounds = array<i64: 2, 2>}, {pipeline_mode = #tpu.pipeline_mode<synchronous>, transform_indices = @transform_3, window_bounds = array<i64: 8, 512>}, {pipeline_mode = #tpu.pipeline_mode<synchronous>, transform_indices = @transform_4, window_bounds = array<i64: 1, 512>}, {pipeline_mode = #tpu.pipeline_mode<synchronous>, transform_indices = @transform_5, window_bounds = array<i64: 512, 256>}, {pipeline_mode = #tpu.pipeline_mode<synchronous>, transform_indices = @transform_6, window_bounds = array<i64: 2, 256>}, {pipeline_mode = #tpu.pipeline_mode<synchronous>, transform_indices = @transform_7, window_bounds = array<i64: 1, 256>}, {pipeline_mode = #tpu.pipeline_mode<synchronous>, transform_indices = @transform_8, window_bounds = array<i64: 1, 256>}, {pipeline_mode = #tpu.pipeline_mode<synchronous>, transform_indices = @transform_9, window_bounds = array<i64: 1, 1>}, {transform_indices = @transform_10, window_bounds = array<i64: 2, 1>}]} {
    %c0 = arith.constant 0 : index
    %c0_0 = arith.constant 0 : index
    %0 = vector.load %arg2[%c0, %c0_0] : memref<2x8xf32, #tpu.memory_space<vmem>>, vector<2x8xf32>
    %c0_1 = arith.constant 0 : index
    %c0_2 = arith.constant 0 : index
    %1 = vector.load %arg3[%c0_1, %c0_2] : memref<2x2xf32, #tpu.memory_space<vmem>>, vector<2x2xf32>
    %2 = vector.extract_strided_slice %0 {offsets = [0, 0], sizes = [2, 1], strides = [1, 1]} : vector<2x8xf32> to vector<2x1xf32>
    %c0_3 = arith.constant 0 : index
    %c0_4 = arith.constant 0 : index
    %3 = vector.load %arg4[%c0_3, %c0_4] : memref<8x512xf32, #tpu.memory_space<vmem>>, vector<1x512xf32>
    %4 = vector.broadcast %2 : vector<2x1xf32> to vector<2x512xf32>
    %5 = vector.broadcast %3 : vector<1x512xf32> to vector<2x512xf32>
    %6 = arith.mulf %4, %5 : vector<2x512xf32>
    %7 = vector.extract_strided_slice %0 {offsets = [0, 1], sizes = [2, 1], strides = [1, 1]} : vector<2x8xf32> to vector<2x1xf32>
    %c1 = arith.constant 1 : index
    %c0_5 = arith.constant 0 : index
    %8 = vector.load %arg4[%c1, %c0_5] : memref<8x512xf32, #tpu.memory_space<vmem>>, vector<1x512xf32>
    %9 = vector.broadcast %7 : vector<2x1xf32> to vector<2x512xf32>
    %10 = vector.broadcast %8 : vector<1x512xf32> to vector<2x512xf32>
    %11 = arith.mulf %9, %10 : vector<2x512xf32>
    %12 = arith.addf %6, %11 : vector<2x512xf32>
    %13 = vector.extract_strided_slice %0 {offsets = [0, 2], sizes = [2, 1], strides = [1, 1]} : vector<2x8xf32> to vector<2x1xf32>
    %c2 = arith.constant 2 : index
    %c0_6 = arith.constant 0 : index
    %14 = vector.load %arg4[%c2, %c0_6] : memref<8x512xf32, #tpu.memory_space<vmem>>, vector<1x512xf32>
    %15 = vector.broadcast %13 : vector<2x1xf32> to vector<2x512xf32>
    %16 = vector.broadcast %14 : vector<1x512xf32> to vector<2x512xf32>
    %17 = arith.mulf %15, %16 : vector<2x512xf32>
    %18 = arith.addf %12, %17 : vector<2x512xf32>
    %19 = vector.extract_strided_slice %0 {offsets = [0, 3], sizes = [2, 1], strides = [1, 1]} : vector<2x8xf32> to vector<2x1xf32>
    %c3 = arith.constant 3 : index
    %c0_7 = arith.constant 0 : index
    %20 = vector.load %arg4[%c3, %c0_7] : memref<8x512xf32, #tpu.memory_space<vmem>>, vector<1x512xf32>
    %21 = vector.broadcast %19 : vector<2x1xf32> to vector<2x512xf32>
    %22 = vector.broadcast %20 : vector<1x512xf32> to vector<2x512xf32>
    %23 = arith.mulf %21, %22 : vector<2x512xf32>
    %24 = arith.addf %18, %23 : vector<2x512xf32>
    %25 = vector.extract_strided_slice %0 {offsets = [0, 4], sizes = [2, 1], strides = [1, 1]} : vector<2x8xf32> to vector<2x1xf32>
    %c4 = arith.constant 4 : index
    %c0_8 = arith.constant 0 : index
    %26 = vector.load %arg4[%c4, %c0_8] : memref<8x512xf32, #tpu.memory_space<vmem>>, vector<1x512xf32>
    %27 = vector.broadcast %25 : vector<2x1xf32> to vector<2x512xf32>
    %28 = vector.broadcast %26 : vector<1x512xf32> to vector<2x512xf32>
    %29 = arith.mulf %27, %28 : vector<2x512xf32>
    %30 = arith.addf %24, %29 : vector<2x512xf32>
    %31 = vector.extract_strided_slice %0 {offsets = [0, 5], sizes = [2, 1], strides = [1, 1]} : vector<2x8xf32> to vector<2x1xf32>
    %c5 = arith.constant 5 : index
    %c0_9 = arith.constant 0 : index
    %32 = vector.load %arg4[%c5, %c0_9] : memref<8x512xf32, #tpu.memory_space<vmem>>, vector<1x512xf32>
    %33 = vector.broadcast %31 : vector<2x1xf32> to vector<2x512xf32>
    %34 = vector.broadcast %32 : vector<1x512xf32> to vector<2x512xf32>
    %35 = arith.mulf %33, %34 : vector<2x512xf32>
    %36 = arith.addf %30, %35 : vector<2x512xf32>
    %37 = vector.extract_strided_slice %0 {offsets = [0, 6], sizes = [2, 1], strides = [1, 1]} : vector<2x8xf32> to vector<2x1xf32>
    %c6 = arith.constant 6 : index
    %c0_10 = arith.constant 0 : index
    %38 = vector.load %arg4[%c6, %c0_10] : memref<8x512xf32, #tpu.memory_space<vmem>>, vector<1x512xf32>
    %39 = vector.broadcast %37 : vector<2x1xf32> to vector<2x512xf32>
    %40 = vector.broadcast %38 : vector<1x512xf32> to vector<2x512xf32>
    %41 = arith.mulf %39, %40 : vector<2x512xf32>
    %42 = arith.addf %36, %41 : vector<2x512xf32>
    %43 = vector.extract_strided_slice %0 {offsets = [0, 7], sizes = [2, 1], strides = [1, 1]} : vector<2x8xf32> to vector<2x1xf32>
    %c7 = arith.constant 7 : index
    %c0_11 = arith.constant 0 : index
    %44 = vector.load %arg4[%c7, %c0_11] : memref<8x512xf32, #tpu.memory_space<vmem>>, vector<1x512xf32>
    %45 = vector.broadcast %43 : vector<2x1xf32> to vector<2x512xf32>
    %46 = vector.broadcast %44 : vector<1x512xf32> to vector<2x512xf32>
    %47 = arith.mulf %45, %46 : vector<2x512xf32>
    %48 = arith.addf %42, %47 : vector<2x512xf32>
    %c0_12 = arith.constant 0 : index
    %c0_13 = arith.constant 0 : index
    %49 = vector.load %arg5[%c0_12, %c0_13] : memref<1x512xf32, #tpu.memory_space<vmem>>, vector<1x512xf32>
    %50 = vector.broadcast %49 : vector<1x512xf32> to vector<2x512xf32>
    %51 = arith.addf %48, %50 : vector<2x512xf32>
    %cst = arith.constant 0.000000e+00 : f32
    %52 = vector.broadcast %cst : f32 to vector<2x512xf32>
    %53 = arith.maximumf %51, %52 : vector<2x512xf32>
    %c0_14 = arith.constant 0 : index
    %c0_15 = arith.constant 0 : index
    %54 = vector.load %arg6[%c0_14, %c0_15] : memref<512x256xf32, #tpu.memory_space<vmem>>, vector<512x256xf32>
    %cst_16 = arith.constant dense<0.000000e+00> : vector<2x256xf32>
    %55 = tpu.matmul %53, %54, %cst_16 {dimension_numbers = #tpu.dot_dimension_numbers<[1], [0], [0], [1], [0, 0, 1, 1], [], []>} : vector<2x512xf32>, vector<512x256xf32>, vector<2x256xf32> -> vector<2x256xf32>
    %c0_17 = arith.constant 0 : index
    %c0_18 = arith.constant 0 : index
    %56 = vector.load %arg8[%c0_17, %c0_18] : memref<1x256xf32, #tpu.memory_space<vmem>>, vector<1x256xf32>
    %57 = vector.broadcast %56 : vector<1x256xf32> to vector<2x256xf32>
    %58 = arith.addf %55, %57 : vector<2x256xf32>
    %59 = vector.extract_strided_slice %1 {offsets = [0, 0], sizes = [2, 1], strides = [1, 1]} : vector<2x2xf32> to vector<2x1xf32>
    %c0_19 = arith.constant 0 : index
    %c0_20 = arith.constant 0 : index
    %60 = vector.load %arg7[%c0_19, %c0_20] : memref<2x256xf32, #tpu.memory_space<vmem>>, vector<1x256xf32>
    %61 = vector.broadcast %59 : vector<2x1xf32> to vector<2x256xf32>
    %62 = vector.broadcast %60 : vector<1x256xf32> to vector<2x256xf32>
    %63 = arith.mulf %61, %62 : vector<2x256xf32>
    %64 = arith.addf %58, %63 : vector<2x256xf32>
    %65 = vector.extract_strided_slice %1 {offsets = [0, 1], sizes = [2, 1], strides = [1, 1]} : vector<2x2xf32> to vector<2x1xf32>
    %c1_21 = arith.constant 1 : index
    %c0_22 = arith.constant 0 : index
    %66 = vector.load %arg7[%c1_21, %c0_22] : memref<2x256xf32, #tpu.memory_space<vmem>>, vector<1x256xf32>
    %67 = vector.broadcast %65 : vector<2x1xf32> to vector<2x256xf32>
    %68 = vector.broadcast %66 : vector<1x256xf32> to vector<2x256xf32>
    %69 = arith.mulf %67, %68 : vector<2x256xf32>
    %70 = arith.addf %64, %69 : vector<2x256xf32>
    %cst_23 = arith.constant 0.000000e+00 : f32
    %71 = vector.broadcast %cst_23 : f32 to vector<2x256xf32>
    %72 = arith.maximumf %70, %71 : vector<2x256xf32>
    %c0_24 = arith.constant 0 : index
    %c0_25 = arith.constant 0 : index
    %73 = vector.load %arg9[%c0_24, %c0_25] : memref<1x256xf32, #tpu.memory_space<vmem>>, vector<1x256xf32>
    %74 = vector.broadcast %73 : vector<1x256xf32> to vector<2x256xf32>
    %75 = arith.mulf %72, %74 : vector<2x256xf32>
    %cst_26 = arith.constant dense<0.000000e+00> : vector<2xf32>
    %76 = vector.multi_reduction <add>, %75, %cst_26 [1] : vector<2x256xf32> to vector<2xf32>
    %77 = vector.shape_cast %76 : vector<2xf32> to vector<2x1xf32>
    %c0_27 = arith.constant 0 : index
    %c0_28 = arith.constant 0 : index
    %78 = vector.load %arg10[%c0_27, %c0_28] : memref<1x1xf32, #tpu.memory_space<vmem>>, vector<1x1xf32>
    %79 = vector.broadcast %78 : vector<1x1xf32> to vector<2x1xf32>
    %80 = arith.addf %77, %79 : vector<2x1xf32>
    %c0_29 = arith.constant 0 : index
    %c0_30 = arith.constant 0 : index
    %81 = memref.load %arg1[%c0_29, %c0_30] : memref<1x1xf32, #tpu.memory_space<smem>>
    %82 = math.tanh %80 : vector<2x1xf32>
    %83 = vector.broadcast %81 : f32 to vector<2x1xf32>
    %84 = arith.mulf %83, %82 : vector<2x1xf32>
    %c0_31 = arith.constant 0 : index
    %c0_32 = arith.constant 0 : index
    %85 = vector.load %arg11[%c0_31, %c0_32] : memref<2x1xf32, #tpu.memory_space<vmem>>, vector<2x1xf32>
    tpu.vector_store %arg11[%c0_31, %c0_32], %84 {strides = array<i32>} : memref<2x1xf32, #tpu.memory_space<vmem>>, vector<2x1xf32>,
    return
  }
  func.func @transform_0(%arg0: i32) -> (i32, i32) {
    %c0_i32 = arith.constant 0 : i32
    %c0_i32_0 = arith.constant 0 : i32
    %c0_i32_1 = arith.constant 0 : i32
    return %c0_i32, %c0_i32_0 : i32, i32
  }
  func.func @transform_1(%arg0: i32) -> (i32, i32) {
    %c0_i32 = arith.constant 0 : i32
    %c0_i32_0 = arith.constant 0 : i32
    return %arg0, %c0_i32 : i32, i32
  }
  func.func @transform_2(%arg0: i32) -> (i32, i32) {
    %c0_i32 = arith.constant 0 : i32
    %c0_i32_0 = arith.constant 0 : i32
    return %arg0, %c0_i32 : i32, i32
  }
  func.func @transform_3(%arg0: i32) -> (i32, i32) {
    %c0_i32 = arith.constant 0 : i32
    %c0_i32_0 = arith.constant 0 : i32
    %c0_i32_1 = arith.constant 0 : i32
    return %c0_i32, %c0_i32_0 : i32, i32
  }
  func.func @transform_4(%arg0: i32) -> (i32, i32) {
    %c0_i32 = arith.constant 0 : i32
    %c0_i32_0 = arith.constant 0 : i32
    %c0_i32_1 = arith.constant 0 : i32
    return %c0_i32, %c0_i32_0 : i32, i32
  }
  func.func @transform_5(%arg0: i32) -> (i32, i32) {
    %c0_i32 = arith.constant 0 : i32
    %c0_i32_0 = arith.constant 0 : i32
    %c0_i32_1 = arith.constant 0 : i32
    return %c0_i32, %c0_i32_0 : i32, i32
  }
  func.func @transform_6(%arg0: i32) -> (i32, i32) {
    %c0_i32 = arith.constant 0 : i32
    %c0_i32_0 = arith.constant 0 : i32
    %c0_i32_1 = arith.constant 0 : i32
    return %c0_i32, %c0_i32_0 : i32, i32
  }
  func.func @transform_7(%arg0: i32) -> (i32, i32) {
    %c0_i32 = arith.constant 0 : i32
    %c0_i32_0 = arith.constant 0 : i32
    %c0_i32_1 = arith.constant 0 : i32
    return %c0_i32, %c0_i32_0 : i32, i32
  }
  func.func @transform_8(%arg0: i32) -> (i32, i32) {
    %c0_i32 = arith.constant 0 : i32
    %c0_i32_0 = arith.constant 0 : i32
    %c0_i32_1 = arith.constant 0 : i32
    return %c0_i32, %c0_i32_0 : i32, i32
  }
  func.func @transform_9(%arg0: i32) -> (i32, i32) {
    %c0_i32 = arith.constant 0 : i32
    %c0_i32_0 = arith.constant 0 : i32
    %c0_i32_1 = arith.constant 0 : i32
    return %c0_i32, %c0_i32_0 : i32, i32
  }
  func.func @transform_10(%arg0: i32) -> (i32, i32) {
    %c0_i32 = arith.constant 0 : i32
    %c0_i32_0 = arith.constant 0 : i32
    return %arg0, %c0_i32 : i32, i32
  }
}

</mosaic_0001>

<bundles_post_ra>
// kernel: tpu_custom_call.1
= control target key start
LH: loop header
LB: loop body
LE: loop exit
PB: predicated region body
PF: predicated region fallthrough
CT: control target
= control target key end

     0   :  { %s1053_s0 = inlined_call_operand.<no memory space> [shape: f32[1,1], index: 0, kind: input, shape index: {}]   ;;  %s1054_s1 = inlined_call_operand.hbm [shape: f32[2,8], index: 1, kind: input, shape index: {}]   ;;  %s1055_s2 = inlined_call_operand.hbm [shape: f32[2,2], index: 2, kind: input, shape index: {}]   ;;  %s1056_s3 = inlined_call_operand.hbm [shape: f32[8,512], index: 3, kind: input, shape index: {}]   ;;  %s1057_s4 = inlined_call_operand.vmem [shape: f32[1,512], index: 4, kind: input, shape index: {}]   ;;  %s1058_s5 = inlined_call_operand.hbm [shape: f32[512,256], index: 5, kind: input, shape index: {}]   ;;  %s1059_s6 = inlined_call_operand.vmem [shape: f32[2,256], index: 6, kind: input, shape index: {}]   ;;  %s1060_s7 = inlined_call_operand.hbm [shape: f32[1,256], index: 7, kind: input, shape index: {}]   ;;  %s1061_s8 = inlined_call_operand.vmem [shape: f32[1,256], index: 8, kind: input, shape index: {}]   ;;  %s1062_s9 = inlined_call_operand.<no memory space> [shape: f32[1,1], index: 9, kind: input, shape index: {}]   ;;  %s1063_s10 = inlined_call_operand.vmem [shape: f32[2,1], index: 10, kind: output, shape index: {}]  }
   0x1   :  { %v16_v0 = vstv %s1062_s9 }
   0x2   :  { %17 = vst [vmem:[#allocation3] sm:$0x1] %v16_v0 }
   0x3   :  { %18 = vsyncpa [#allocation5], 0 }
   0x4   :  { %19 = vsyncpa [#allocation7], 0  ;;  %s39_s17 = sshll.u32 %s1055_s2, 4  ;;  %s40_s17 = int_to_ptr.hbm [resolvable:$true] %s39_s17 }
   0x5   :  { %20 = vsyncpa [#allocation10], 0  ;;  %s822_s18 = smov [#allocation6]   ;;  %s62_s22 = sshll.u32 %s1058_s5, 4  ;;  %s63_s22 = int_to_ptr.hbm [resolvable:$true] %s62_s22 }
   0x6   :  { %s41_s19 = sshll.u32 %s822_s18, 4  ;;  %s823_s23 = smov [#allocation9]   ;;  %s42_s19 = int_to_ptr.vmem [resolvable:$true] %s41_s19 }
   0x7   :  { %44 = dma.hbm_to_vmem [thread:$0]  %s40_s17, 32, %s42_s19, [#allocation7]  }
   0x8   :  { %s64_s9 = sshll.u32 %s823_s23, 4  ;;  %s824_s24 = smov 256   ;;  %s65_s9 = int_to_ptr.vmem [resolvable:$true] %s64_s9 }
   0x9   :  { %s825_s25 = smov 16   ;;  %s28_s2 = sshll.u32 %s1054_s1, 4  ;;  %s29_s2 = int_to_ptr.hbm [resolvable:$true] %s28_s2 }
   0xa   :  { %70 = dma.hbm_to_vmem [thread:$0]  %s63_s22, 16384, %s65_s9, [#allocation10], %s824_s24, %s824_s24, %s825_s25  }
   0xb   :  { %s826_s28 = smov [#allocation4]   ;;  %s50_s5 = sshll.u32 %s1056_s3, 4  ;;  %s51_s5 = int_to_ptr.hbm [resolvable:$true] %s50_s5 }
   0xc   :  { %s30_s29 = sshll.u32 %s826_s28, 4  ;;  %s827_s12 = smov [#allocation8]   ;;  %s31_s29 = int_to_ptr.vmem [resolvable:$true] %s30_s29 }
   0xd   :  { %33 = dma.hbm_to_vmem [thread:$0]  %s29_s2, 32, %s31_s29, [#allocation5]  }
   0xe   :  { %s52_s13 = sshll.u32 %s827_s12, 4  ;;  %s78_s16 = sshll.u32 %s1060_s7, 4  ;;  %s53_s13 = int_to_ptr.vmem [resolvable:$true] %s52_s13  ;;  %s79_s16 = int_to_ptr.hbm [resolvable:$true] %s78_s16 }
   0xf   :  { %55 = dma.hbm_to_vmem [thread:$0]  %s51_s5, 512, %s53_s13, [#allocation7]  }
  0x10   :  { %s828_s1 = smov [#allocation11]  }
  0x11   :  { %s80_s17 = sshll.u32 %s828_s1, 4  ;;  %s81_s17 = int_to_ptr.vmem [resolvable:$true] %s80_s17 }
  0x12   :  { %83 = dma.hbm_to_vmem [thread:$0]  %s79_s16, 32, %s81_s17, [#allocation10]  }
  0x13   :  { %816 = dma.done.wait [#allocation5], 32  }
  0x14   :  { %817 = vsyncadd [#allocation5], 4294967264 }
  0x15   :  { %818 = dma.done.wait [#allocation7], 544  }
  0x16   :  { %819 = vsyncadd [#allocation7], 4294966752 }
  0x17   :  { %820 = dma.done.wait [#allocation10], 16416  }
  0x18   :  { %821 = vsyncadd [#allocation10], 4294950880  ;;  %v829_v1 = vmov 0   ;;  %v830_v2 = vmov 2   ;;  %v831_v3 = vmov 4   ;;  %v338_v5 = vld [vmem:[#allocation9 + $0xf0] sm:$0xff] }
  0x19   :  { %682 = vset.pattern.permute.xlu0 %v829_v1  ;;  %684 = vset.pattern.permute.xlu1 %v830_v2  ;;  %v911_v4 = vld [vmem:[#allocation4] sm:$0x3]  ;;  %v370_v6 = vld [vmem:[#allocation9 + $0x1f0] sm:$0xff]  ;;  %v336_v9 = vld [vmem:[#allocation9 + $0xe0] sm:$0xff]  ;;  %v832_v19 = vmov 1   ;;  %v833_v20 = vmov 3  }
  0x1a   :  { %686 = vset.pattern.permute.xlu2 %v831_v3  ;;  %113 = vperm.xlu0 %682, %v911_v4   ;;  %v402_v7 = vld [vmem:[#allocation9 + $0x2f0] sm:$0xff]  ;;  %v368_v10 = vld [vmem:[#allocation9 + $0x1e0] sm:$0xff]  ;;  %v834_v24 = vmov 5   ;;  %v835_v36 = vmov 6   ;;  %v836_v40 = vmov 7   ;;  %vm642_vm0 = vcmask 1041408  }
  0x1b   :  { %155 = vperm.xlu1 %684, %v911_v4   ;;  %v434_v8 = vld [vmem:[#allocation9 + $0x3f0] sm:$0xff]  ;;  %201 = vperm.xlu2 %686, %v911_v4   ;;  %v400_v11 = vld [vmem:[#allocation9 + $0x2e0] sm:$0xff]  ;;  %vm657_vm1 = vcmask 1024  }
  0x1c   :  { %442 = vmatpush.msra.mxu0 %v338_v5  ;;  %462 = vmatpush.msra.mxu1 %v370_v6  ;;  %v432_v12 = vld [vmem:[#allocation9 + $0x3e0] sm:$0xff]  ;;  %v334_v13 = vld [vmem:[#allocation9 + $0xd0] sm:$0xff] }
  0x1d   :  { %482 = vmatpush.msra.mxu2 %v402_v7  ;;  %502 = vmatpush.msra.mxu3 %v434_v8  ;;  %v366_v14 = vld [vmem:[#allocation9 + $0x1d0] sm:$0xff]  ;;  %v332_v17 = vld [vmem:[#allocation9 + $0xc0] sm:$0xff] }
  0x1e   :  { %443 = vmatpush.msra.mxu0 %v336_v9  ;;  %v398_v15 = vld [vmem:[#allocation9 + $0x2d0] sm:$0xff]  ;;  %463 = vmatpush.msra.mxu1 %v368_v10  ;;  %v364_v18 = vld [vmem:[#allocation9 + $0x1c0] sm:$0xff]  ;;  %v339_v10 = vld [vmem:[#allocation9 + $0xf8] sm:$0xff] }
  0x1f   :  { %483 = vmatpush.msra.mxu2 %v400_v11  ;;  %v430_v16 = vld [vmem:[#allocation9 + $0x3d0] sm:$0xff]  ;;  %503 = vmatpush.msra.mxu3 %v432_v12  ;;  %v396_v21 = vld [vmem:[#allocation9 + $0x2c0] sm:$0xff]  ;;  %v371_v11 = vld [vmem:[#allocation9 + $0x1f8] sm:$0xff] }
  0x20   :  { %444 = vmatpush.msra.mxu0 %v334_v13  ;;  %464 = vmatpush.msra.mxu1 %v366_v14  ;;  %v428_v22 = vld [vmem:[#allocation9 + $0x3c0] sm:$0xff]  ;;  %v330_v23 = vld [vmem:[#allocation9 + $0xb0] sm:$0xff]  ;;  %v403_v12 = vld [vmem:[#allocation9 + $0x2f8] sm:$0xff] }
  0x21   :  { %484 = vmatpush.msra.mxu2 %v398_v15  ;;  %504 = vmatpush.msra.mxu3 %v430_v16  ;;  %v362_v25 = vld [vmem:[#allocation9 + $0x1b0] sm:$0xff]  ;;  %v328_v28 = vld [vmem:[#allocation9 + $0xa0] sm:$0xff]  ;;  %v435_v13 = vld [vmem:[#allocation9 + $0x3f8] sm:$0xff] }
  0x22   :  { %445 = vmatpush.msra.mxu0 %v332_v17  ;;  %683 = vset.pattern.permute.xlu0 %v832_v19  ;;  %v394_v26 = vld [vmem:[#allocation9 + $0x2b0] sm:$0xff]  ;;  %v360_v29 = vld [vmem:[#allocation9 + $0x1a0] sm:$0xff]  ;;  %v337_v14 = vld [vmem:[#allocation9 + $0xe8] sm:$0xff] }
  0x23   :  { %685 = vset.pattern.permute.xlu1 %v833_v20  ;;  %132 = vperm.xlu0 %683, %v911_v4   ;;  %v426_v27 = vld [vmem:[#allocation9 + $0x3b0] sm:$0xff]  ;;  %v392_v30 = vld [vmem:[#allocation9 + $0x2a0] sm:$0xff]  ;;  %v369_v15 = vld [vmem:[#allocation9 + $0x1e8] sm:$0xff] }
  0x24   :  { %178 = vperm.xlu1 %685, %v911_v4   ;;  %687 = vset.pattern.permute.xlu2 %v834_v24  ;;  %v424_v31 = vld [vmem:[#allocation9 + $0x3a0] sm:$0xff]  ;;  %v326_v32 = vld [vmem:[#allocation9 + $0x90] sm:$0xff]  ;;  %v401_v16 = vld [vmem:[#allocation9 + $0x2e8] sm:$0xff] }
  0x25   :  { %465 = vmatpush.msra.mxu1 %v364_v18  ;;  %224 = vperm.xlu2 %687, %v911_v4   ;;  %v358_v33 = vld [vmem:[#allocation9 + $0x190] sm:$0xff]  ;;  %v324_v37 = vld [vmem:[#allocation9 + $0x80] sm:$0xff]  ;;  %v433_v17 = vld [vmem:[#allocation9 + $0x3e8] sm:$0xff] }
  0x26   :  { %485 = vmatpush.msra.mxu2 %v396_v21  ;;  %505 = vmatpush.msra.mxu3 %v428_v22  ;;  %v390_v34 = vld [vmem:[#allocation9 + $0x290] sm:$0xff]  ;;  %v356_v38 = vld [vmem:[#allocation9 + $0x180] sm:$0xff]  ;;  %v335_v18 = vld [vmem:[#allocation9 + $0xd8] sm:$0xff] }
  0x27   :  { %446 = vmatpush.msra.mxu0 %v330_v23  ;;  %466 = vmatpush.msra.mxu1 %v362_v25  ;;  %v422_v35 = vld [vmem:[#allocation9 + $0x390] sm:$0xff]  ;;  %v388_v39 = vld [vmem:[#allocation9 + $0x280] sm:$0xff]  ;;  %v367_v20 = vld [vmem:[#allocation9 + $0x1d8] sm:$0xff] }
  0x28   :  { %486 = vmatpush.msra.mxu2 %v394_v26  ;;  %506 = vmatpush.msra.mxu3 %v426_v27  ;;  %v420_v41 = vld [vmem:[#allocation9 + $0x380] sm:$0xff]  ;;  %v322_v42 = vld [vmem:[#allocation9 + $0x70] sm:$0xff]  ;;  %v399_v21 = vld [vmem:[#allocation9 + $0x2d8] sm:$0xff] }
  0x29   :  { %447 = vmatpush.msra.mxu0 %v328_v28  ;;  %467 = vmatpush.msra.mxu1 %v360_v29  ;;  %v354_v43 = vld [vmem:[#allocation9 + $0x170] sm:$0xff]  ;;  %v320_v46 = vld [vmem:[#allocation9 + $0x60] sm:$0xff]  ;;  %v431_v22 = vld [vmem:[#allocation9 + $0x3d8] sm:$0xff] }
  0x2a   :  { %487 = vmatpush.msra.mxu2 %v392_v30  ;;  %507 = vmatpush.msra.mxu3 %v424_v31  ;;  %v386_v44 = vld [vmem:[#allocation9 + $0x270] sm:$0xff]  ;;  %v352_v47 = vld [vmem:[#allocation9 + $0x160] sm:$0xff]  ;;  %v333_v23 = vld [vmem:[#allocation9 + $0xc8] sm:$0xff] }
  0x2b   :  { %448 = vmatpush.msra.mxu0 %v326_v32  ;;  %468 = vmatpush.msra.mxu1 %v358_v33  ;;  %v418_v45 = vld [vmem:[#allocation9 + $0x370] sm:$0xff]  ;;  %v384_v48 = vld [vmem:[#allocation9 + $0x260] sm:$0xff]  ;;  %v365_v24 = vld [vmem:[#allocation9 + $0x1c8] sm:$0xff] }
  0x2c   :  { %688 = vset.pattern.permute.xlu1 %v835_v36  ;;  %488 = vmatpush.msra.mxu2 %v390_v34  ;;  %v416_v49 = vld [vmem:[#allocation9 + $0x360] sm:$0xff]  ;;  %v318_v50 = vld [vmem:[#allocation9 + $0x50] sm:$0xff]  ;;  %v397_v25 = vld [vmem:[#allocation9 + $0x2c8] sm:$0xff] }
  0x2d   :  { %247 = vperm.xlu1 %688, %v911_v4   ;;  %689 = vset.pattern.permute.xlu2 %v836_v40  ;;  %v350_v51 = vld [vmem:[#allocation9 + $0x150] sm:$0xff]  ;;  %v316_v54 = vld [vmem:[#allocation9 + $0x40] sm:$0xff]  ;;  %v429_v26 = vld [vmem:[#allocation9 + $0x3c8] sm:$0xff] }
  0x2e   :  { %508 = vmatpush.msra.mxu3 %v422_v35  ;;  %270 = vperm.xlu2 %689, %v911_v4   ;;  %v382_v52 = vld [vmem:[#allocation9 + $0x250] sm:$0xff]  ;;  %v348_v55 = vld [vmem:[#allocation9 + $0x140] sm:$0xff]  ;;  %v331_v27 = vld [vmem:[#allocation9 + $0xb8] sm:$0xff] }
  0x2f   :  { %449 = vmatpush.msra.mxu0 %v324_v37  ;;  %469 = vmatpush.msra.mxu1 %v356_v38  ;;  %v414_v53 = vld [vmem:[#allocation9 + $0x350] sm:$0xff]  ;;  %v380_v56 = vld [vmem:[#allocation9 + $0x240] sm:$0xff]  ;;  %v363_v28 = vld [vmem:[#allocation9 + $0x1b8] sm:$0xff] }
  0x30   :  { %489 = vmatpush.msra.mxu2 %v388_v39  ;;  %509 = vmatpush.msra.mxu3 %v420_v41  ;;  %v412_v57 = vld [vmem:[#allocation9 + $0x340] sm:$0xff]  ;;  %v314_v58 = vld [vmem:[#allocation9 + $0x30] sm:$0xff]  ;;  %v395_v29 = vld [vmem:[#allocation9 + $0x2b8] sm:$0xff] }
  0x31   :  { %450 = vmatpush.msra.mxu0 %v322_v42  ;;  %470 = vmatpush.msra.mxu1 %v354_v43  ;;  %v346_v59 = vld [vmem:[#allocation9 + $0x130] sm:$0xff]  ;;  %v312_v62 = vld [vmem:[#allocation9 + $0x20] sm:$0xff]  ;;  %v427_v30 = vld [vmem:[#allocation9 + $0x3b8] sm:$0xff] }
  0x32   :  { %490 = vmatpush.msra.mxu2 %v386_v44  ;;  %510 = vmatpush.msra.mxu3 %v418_v45  ;;  %v378_v60 = vld [vmem:[#allocation9 + $0x230] sm:$0xff]  ;;  %v344_v63 = vld [vmem:[#allocation9 + $0x120] sm:$0xff]  ;;  %v329_v31 = vld [vmem:[#allocation9 + $0xa8] sm:$0xff] }
  0x33   :  { %451 = vmatpush.msra.mxu0 %v320_v46  ;;  %471 = vmatpush.msra.mxu1 %v352_v47  ;;  %v410_v61 = vld [vmem:[#allocation9 + $0x330] sm:$0xff]  ;;  %v376_v0 = vld [vmem:[#allocation9 + $0x220] sm:$0xff]  ;;  %v361_v32 = vld [vmem:[#allocation9 + $0x1a8] sm:$0xff] }
  0x34   :  { %491 = vmatpush.msra.mxu2 %v384_v48  ;;  %511 = vmatpush.msra.mxu3 %v416_v49  ;;  %v408_v2 = vld [vmem:[#allocation9 + $0x320] sm:$0xff]  ;;  %v310_v3 = vld [vmem:[#allocation9 + $0x10] sm:$0xff]  ;;  %v393_v33 = vld [vmem:[#allocation9 + $0x2a8] sm:$0xff] }
  0x35   :  { %452 = vmatpush.msra.mxu0 %v318_v50  ;;  %472 = vmatpush.msra.mxu1 %v350_v51  ;;  %v342_v4 = vld [vmem:[#allocation9 + $0x110] sm:$0xff]  ;;  %v308_v7 = vld [vmem:[#allocation9] sm:$0xff]  ;;  %v425_v34 = vld [vmem:[#allocation9 + $0x3a8] sm:$0xff] }
  0x36   :  { %492 = vmatpush.msra.mxu2 %v382_v52  ;;  %512 = vmatpush.msra.mxu3 %v414_v53  ;;  %v374_v5 = vld [vmem:[#allocation9 + $0x210] sm:$0xff]  ;;  %v340_v8 = vld [vmem:[#allocation9 + $0x100] sm:$0xff]  ;;  %v327_v35 = vld [vmem:[#allocation9 + $0x98] sm:$0xff] }
  0x37   :  { %453 = vmatpush.msra.mxu0 %v316_v54  ;;  %473 = vmatpush.msra.mxu1 %v348_v55  ;;  %v406_v6 = vld [vmem:[#allocation9 + $0x310] sm:$0xff]  ;;  %v404_v9 = vld [vmem:[#allocation9 + $0x300] sm:$0xff]  ;;  %v359_v36 = vld [vmem:[#allocation9 + $0x198] sm:$0xff] }
  0x38   :  { %493 = vmatpush.msra.mxu2 %v380_v56  ;;  %513 = vmatpush.msra.mxu3 %v412_v57  ;;  %v391_v37 = vld [vmem:[#allocation9 + $0x298] sm:$0xff]  ;;  %v325_v39 = vld [vmem:[#allocation9 + $0x88] sm:$0xff] }
  0x39   :  { %454 = vmatpush.msra.mxu0 %v314_v58  ;;  %474 = vmatpush.msra.mxu1 %v346_v59  ;;  %v423_v38 = vld [vmem:[#allocation9 + $0x398] sm:$0xff]  ;;  %v357_v40 = vld [vmem:[#allocation9 + $0x188] sm:$0xff] }
  0x3a   :  { %494 = vmatpush.msra.mxu2 %v378_v60  ;;  %514 = vmatpush.msra.mxu3 %v410_v61  ;;  %v389_v41 = vld [vmem:[#allocation9 + $0x288] sm:$0xff]  ;;  %v323_v43 = vld [vmem:[#allocation9 + $0x78] sm:$0xff] }
  0x3b   :  { %690 = vset.pattern.permute.xlu0 %v829_v1  ;;  %691 = vset.pattern.permute.xlu1 %v832_v19  ;;  %v372_v1 = vld [vmem:[#allocation9 + $0x200] sm:$0xff]  ;;  %v421_v42 = vld [vmem:[#allocation9 + $0x388] sm:$0xff]  ;;  %v355_v44 = vld [vmem:[#allocation9 + $0x178] sm:$0xff] }
  0x3c   :  { %455 = vmatpush.msra.mxu0 %v312_v62  ;;  %475 = vmatpush.msra.mxu1 %v344_v63  ;;  %v387_v45 = vld [vmem:[#allocation9 + $0x278] sm:$0xff]  ;;  %v321_v47 = vld [vmem:[#allocation9 + $0x68] sm:$0xff] }
  0x3d   :  { %495 = vmatpush.msra.mxu2 %v376_v0  ;;  %515 = vmatpush.msra.mxu3 %v408_v2  ;;  %v419_v46 = vld [vmem:[#allocation9 + $0x378] sm:$0xff]  ;;  %v353_v48 = vld [vmem:[#allocation9 + $0x168] sm:$0xff] }
  0x3e   :  { %456 = vmatpush.msra.mxu0 %v310_v3  ;;  %476 = vmatpush.msra.mxu1 %v342_v4  ;;  %v385_v49 = vld [vmem:[#allocation9 + $0x268] sm:$0xff]  ;;  %v319_v53 = vld [vmem:[#allocation9 + $0x58] sm:$0xff] }
  0x3f   :  { %496 = vmatpush.msra.mxu2 %v374_v5  ;;  %516 = vmatpush.msra.mxu3 %v406_v6  ;;  %v417_v50 = vld [vmem:[#allocation9 + $0x368] sm:$0xff]  ;;  %v351_v54 = vld [vmem:[#allocation9 + $0x158] sm:$0xff] }
  0x40   :  { %457 = vmatpush.msra.mxu0 %v308_v7  ;;  %477 = vmatpush.msra.mxu1 %v340_v8  ;;  %v924_v51 = vld [vmem:[#allocation8] ss:$8 sm:$0xf]  ;;  %v928_v56 = vld [vmem:[#allocation8 + $0x2] ss:$8 sm:$0xf] }
  0x41   :  { %497 = vmatpush.msra.mxu2 %v372_v1  ;;  %517 = vmatpush.msra.mxu3 %v404_v9  ;;  %v383_v55 = vld [vmem:[#allocation9 + $0x258] sm:$0xff]  ;;  %v317_v58 = vld [vmem:[#allocation9 + $0x48] sm:$0xff]  ;;  %v117_v59 = vperm.slane %v924_v51, 0  ;;  %v118_v63 = vperm.slane %v924_v51, 1  ;;  %v119_v0 = vperm.slane %v924_v51, 2  ;;  %v120_v4 = vperm.slane %v924_v51, 3 }
  0x42   :  { %522 = vmatpush.msrb.mxu0 %v339_v10  ;;  %542 = vmatpush.msrb.mxu1 %v371_v11  ;;  %v415_v57 = vld [vmem:[#allocation9 + $0x358] sm:$0xff]  ;;  %v349_v61 = vld [vmem:[#allocation9 + $0x148] sm:$0xff]  ;;  %v159_v5 = vperm.slane %v928_v56, 0  ;;  %v160_v1 = vperm.slane %v928_v56, 1  ;;  %v161_v9 = vperm.slane %v928_v56, 2  ;;  %v162_v10 = vperm.slane %v928_v56, 3 }
  0x43   :  { %562 = vmatpush.msrb.mxu2 %v403_v12  ;;  %582 = vmatpush.msrb.mxu3 %v435_v13  ;;  %v199_v60 = vld [vmem:[#allocation8 + $0x4] ss:$8 sm:$0xf]  ;;  %v933_v2 = vld [vmem:[#allocation8 + $0x1] ss:$8 sm:$0xf] }
  0x44   :  { %523 = vmatpush.msrb.mxu0 %v337_v14  ;;  %543 = vmatpush.msrb.mxu1 %v369_v15  ;;  %v381_v62 = vld [vmem:[#allocation9 + $0x248] sm:$0xff]  ;;  %v315_v7 = vld [vmem:[#allocation9 + $0x38] sm:$0xff]  ;;  %v205_v12 = vperm.slane %v199_v60, 0  ;;  %v206_v15 = vperm.slane %v199_v60, 1 }
  0x45   :  { %563 = vmatpush.msrb.mxu2 %v401_v16  ;;  %583 = vmatpush.msrb.mxu3 %v433_v17  ;;  %v413_v3 = vld [vmem:[#allocation9 + $0x348] sm:$0xff]  ;;  %v347_v13 = vld [vmem:[#allocation9 + $0x138] sm:$0xff]  ;;  %v207_v16 = vperm.slane %v199_v60, 2  ;;  %v208_v17 = vperm.slane %v199_v60, 3 }
  0x46   :  { %524 = vmatpush.msrb.mxu0 %v335_v18  ;;  %544 = vmatpush.msrb.mxu1 %v367_v20  ;;  %v937_v6 = vld [vmem:[#allocation8 + $0x3] ss:$8 sm:$0xf]  ;;  %v136_v18 = vperm.slane %v933_v2, 0 }
  0x47   :  { %564 = vmatpush.msrb.mxu2 %v399_v21  ;;  %584 = vmatpush.msrb.mxu3 %v431_v22  ;;  %v379_v14 = vld [vmem:[#allocation9 + $0x238] sm:$0xff]  ;;  %v313_v21 = vld [vmem:[#allocation9 + $0x28] sm:$0xff]  ;;  %v137_v22 = vperm.slane %v933_v2, 1 }
  0x48   :  { %525 = vmatpush.msrb.mxu0 %v333_v23  ;;  %545 = vmatpush.msrb.mxu1 %v365_v24  ;;  %v411_v20 = vld [vmem:[#allocation9 + $0x338] sm:$0xff]  ;;  %v138_v23 = vperm.slane %v933_v2, 2  ;;  %v139_v24 = vperm.slane %v933_v2, 3 }
  0x49   :  { %565 = vmatpush.msrb.mxu2 %v397_v25  ;;  %585 = vmatpush.msrb.mxu3 %v429_v26  ;;  %v182_v25 = vperm.slane %v937_v6, 0  ;;  %v345_v26 = vld [vmem:[#allocation9 + $0x128] sm:$0xff] }
  0x4a   :  { %526 = vmatpush.msrb.mxu0 %v331_v27  ;;  %546 = vmatpush.msrb.mxu1 %v363_v28  ;;  %v377_v27 = vld [vmem:[#allocation9 + $0x228] sm:$0xff]  ;;  %v183_v28 = vperm.slane %v937_v6, 1 }
  0x4b   :  { %566 = vmatpush.msrb.mxu2 %v395_v29  ;;  %586 = vmatpush.msrb.mxu3 %v427_v30  ;;  %v952_v29 = vld [vmem:[#allocation8 + $0x5] ss:$8 sm:$0xf] }
  0x4c   :  { %527 = vmatpush.msrb.mxu0 %v329_v31  ;;  %547 = vmatpush.msrb.mxu1 %v361_v32  ;;  %v409_v30 = vld [vmem:[#allocation9 + $0x328] sm:$0xff]  ;;  %v311_v31 = vld [vmem:[#allocation9 + $0x18] sm:$0xff] }
  0x4d   :  { %567 = vmatpush.msrb.mxu2 %v393_v33  ;;  %587 = vmatpush.msrb.mxu3 %v425_v34  ;;  %v184_v33 = vperm.slane %v937_v6, 2 }
  0x4e   :  { %528 = vmatpush.msrb.mxu0 %v327_v35  ;;  %548 = vmatpush.msrb.mxu1 %v359_v36  ;;  %v960_v35 = vld [vmem:[#allocation8 + $0x6] ss:$8 sm:$0xf] }
  0x4f   :  { %568 = vmatpush.msrb.mxu2 %v391_v37  ;;  %588 = vmatpush.msrb.mxu3 %v423_v38  ;;  %v343_v36 = vld [vmem:[#allocation9 + $0x118] sm:$0xff] }
  0x50   :  { %529 = vmatpush.msrb.mxu0 %v325_v39  ;;  %549 = vmatpush.msrb.mxu1 %v357_v40  ;;  %v375_v37 = vld [vmem:[#allocation9 + $0x218] sm:$0xff] }
  0x51   :  { %569 = vmatpush.msrb.mxu2 %v389_v41  ;;  %589 = vmatpush.msrb.mxu3 %v421_v42  ;;  %v185_v41 = vperm.slane %v937_v6, 3  ;;  %v972_v42 = vld [vmem:[#allocation8 + $0x7] ss:$8 sm:$0xf] }
  0x52   :  { %530 = vmatpush.msrb.mxu0 %v323_v43  ;;  %550 = vmatpush.msrb.mxu1 %v355_v44  ;;  %v407_v43 = vld [vmem:[#allocation9 + $0x318] sm:$0xff]  ;;  %v309_v44 = vld [vmem:[#allocation9 + $0x8] sm:$0xff]  ;;  %v274_v60 = vperm.slane %v972_v42, 0 }
  0x53   :  { %570 = vmatpush.msrb.mxu2 %v387_v45  ;;  %590 = vmatpush.msrb.mxu3 %v419_v46  ;;  %v228_v45 = vperm.slane %v952_v29, 0  ;;  %v229_v46 = vperm.slane %v952_v29, 1 }
  0x54   :  { %531 = vmatpush.msrb.mxu0 %v321_v47  ;;  %551 = vmatpush.msrb.mxu1 %v353_v48  ;;  %v230_v47 = vperm.slane %v952_v29, 2  ;;  %v231_v48 = vperm.slane %v952_v29, 3 }
  0x55   :  { %571 = vmatpush.msrb.mxu2 %v385_v49  ;;  %591 = vmatpush.msrb.mxu3 %v417_v50  ;;  %v341_v49 = vld [vmem:[#allocation9 + $0x108] sm:$0xff] }
  0x56   :  { %532 = vmatpush.msrb.mxu0 %v319_v53  ;;  %552 = vmatpush.msrb.mxu1 %v351_v54  ;;  %v373_v50 = vld [vmem:[#allocation9 + $0x208] sm:$0xff]  ;;  %v252_v53 = vperm.slane %v960_v35, 1  ;;  %v253_v54 = vperm.slane %v960_v35, 2 }
  0x57   :  { %572 = vmatpush.msrb.mxu2 %v383_v55  ;;  %592 = vmatpush.msrb.mxu3 %v415_v57  ;;  %v254_v55 = vperm.slane %v960_v35, 3  ;;  %v405_v57 = vld [vmem:[#allocation9 + $0x308] sm:$0xff] }
  0x58   :  { %533 = vmatpush.msrb.mxu0 %v317_v58  ;;  %553 = vmatpush.msrb.mxu1 %v349_v61  ;;  %v275_v61 = vperm.slane %v972_v42, 1 }
  0x59   :  { %573 = vmatpush.msrb.mxu2 %v381_v62  ;;  %593 = vmatpush.msrb.mxu3 %v413_v3  ;;  %v276_v62 = vperm.slane %v972_v42, 2  ;;  %v109_v3 = vld [vmem:[#allocation6] sm:$0x3] }
  0x5a   :  { %534 = vmatpush.msrb.mxu0 %v315_v7  ;;  %554 = vmatpush.msrb.mxu1 %v347_v13 }
  0x5b   :  { %574 = vmatpush.msrb.mxu2 %v379_v14  ;;  %594 = vmatpush.msrb.mxu3 %v411_v20 }
  0x5c   :  { %535 = vmatpush.msrb.mxu0 %v313_v21  ;;  %555 = vmatpush.msrb.mxu1 %v345_v26 }
  0x5d   :  { %575 = vmatpush.msrb.mxu2 %v377_v27  ;;  %595 = vmatpush.msrb.mxu3 %v409_v30 }
  0x5e   :  { %536 = vmatpush.msrb.mxu0 %v311_v31  ;;  %556 = vmatpush.msrb.mxu1 %v343_v36 }
  0x5f   :  { %576 = vmatpush.msrb.mxu2 %v375_v37  ;;  %596 = vmatpush.msrb.mxu3 %v407_v43 }
  0x60   :  { %537 = vmatpush.msrb.mxu0 %v309_v44  ;;  %557 = vmatpush.msrb.mxu1 %v341_v49 }
  0x61   :  { %577 = vmatpush.msrb.mxu2 %v373_v50  ;;  %597 = vmatpush.msrb.mxu3 %v405_v57 }
  0x62   :  { %605 = vperm.xlu0 %690, %v109_v3   ;;  %620 = vperm.xlu1 %691, %v109_v3  }
  0x6a   :  { %692 = vset.pattern.permute.xlu0 %v832_v19 }
  0x75   :  { %v926_v52 = vpop.permute.xlu2 %201 }
  0x76   :  { %v955_v32 = vmul.f32 %v205_v12, %v926_v52  ;;  %v963_v38 = vmul.f32 %v206_v15, %v926_v52  ;;  %v966_v39 = vmul.f32 %v207_v16, %v926_v52  ;;  %v969_v40 = vmul.f32 %v208_v17, %v926_v52 }
  0x77   :  { %v251_v52 = vperm.slane %v960_v35, 0  ;;  %v277_v15 = vperm.slane %v972_v42, 3 }
  0x7f   :  { %v958_v34 = vpop.permute.xlu2 %224 }
  0x80   :  { %v236_v27 = vmul.f32 %v228_v45, %v958_v34  ;;  %v237_v29 = vmul.f32 %v229_v46, %v958_v34  ;;  %v238_v30 = vmul.f32 %v230_v47, %v958_v34 }
  0x8c   :  { %v939_v8 = vpop.permute.xlu0 %113 }
  0x8d   :  { %v944_v11 = vpop.permute.xlu1 %155  ;;  %v125_v58 = vmul.f32 %v117_v59, %v939_v8  ;;  %v126_v7 = vmul.f32 %v118_v63, %v939_v8  ;;  %v127_v12 = vmul.f32 %v119_v0, %v939_v8  ;;  %v128_v59 = vmul.f32 %v120_v4, %v939_v8 }
  0x8e   :  { %v167_v0 = vmul.f32 %v159_v5, %v944_v11  ;;  %v168_v51 = vmul.f32 %v160_v1, %v944_v11  ;;  %v169_v4 = vmul.f32 %v161_v9, %v944_v11  ;;  %v170_v2 = vmul.f32 %v162_v10, %v944_v11  ;;  %v271_v11 = vpop.permute.xlu2 %270 }
  0x8f   :  { %v282_v6 = vmul.f32 %v274_v60, %v271_v11  ;;  %v285_v42 = vmul.f32 %v277_v15, %v271_v11 }
  0x95   :  { %v133_v13 = vpop.permute.xlu0 %132 }
  0x96   :  { %v179_v14 = vpop.permute.xlu1 %178  ;;  %v144_v16 = vmul.f32 %v136_v18, %v133_v13  ;;  %v145_v17 = vmul.f32 %v137_v22, %v133_v13  ;;  %v146_v20 = vmul.f32 %v138_v23, %v133_v13  ;;  %v147_v63 = vmul.f32 %v139_v24, %v133_v13 }
  0x97   :  { %v190_v5 = vmul.f32 %v182_v25, %v179_v14  ;;  %v191_v1 = vmul.f32 %v183_v28, %v179_v14  ;;  %v192_v23 = vmul.f32 %v184_v33, %v179_v14  ;;  %v193_v9 = vmul.f32 %v185_v41, %v179_v14 }
  0x98   :  { %v148_v8 = vadd.f32 %v144_v16, %v125_v58  ;;  %v149_v18 = vadd.f32 %v145_v17, %v126_v7  ;;  %v150_v21 = vadd.f32 %v146_v20, %v127_v12  ;;  %v151_v22 = vadd.f32 %v147_v63, %v128_v59  ;;  %v436_v63 = vld [vmem:[#allocation11] sm:$0x3] }
  0x99   :  { %v239_v25 = vmul.f32 %v231_v48, %v958_v34  ;;  %v283_v33 = vmul.f32 %v275_v61, %v271_v11  ;;  %v284_v41 = vmul.f32 %v276_v62, %v271_v11  ;;  %v290_v34 = vld [vmem:[%s1057_s4] sm:$0xf] }
  0x9a   :  { %v171_v24 = vadd.f32 %v167_v0, %v148_v8  ;;  %v172_v26 = vadd.f32 %v168_v51, %v149_v18  ;;  %v173_v56 = vadd.f32 %v169_v4, %v150_v21  ;;  %v174_v10 = vadd.f32 %v170_v2, %v151_v22  ;;  %v602_v4 = vld [vmem:[%s1059_s6] ss:$2 sm:$0x3]  ;;  %v666_v22 = vld [vmem:[%s1059_s6 + $0x1] ss:$2 sm:$0x3] }
  0x9b   :  { %v292_v58 = vperm.slane %v290_v34, 0  ;;  %v293_v60 = vperm.slane %v290_v34, 1  ;;  %v294_v61 = vperm.slane %v290_v34, 2  ;;  %v295_v62 = vperm.slane %v290_v34, 3 }
  0x9c   :  { %v194_v31 = vadd.f32 %v190_v5, %v171_v24  ;;  %v195_v36 = vadd.f32 %v191_v1, %v172_v26  ;;  %v196_v28 = vadd.f32 %v192_v23, %v173_v56  ;;  %v197_v37 = vadd.f32 %v193_v9, %v174_v10 }
  0x9d   :  { %v438_v0 = vperm.slane %v436_v63, 0  ;;  %v609_v18 = vperm.slane %v602_v4, 0  ;;  %v439_v1 = vperm.slane %v436_v63, 1  ;;  %v624_v10 = vperm.slane %v666_v22, 0 }
  0x9e   :  { %v217_v43 = vadd.f32 %v955_v32, %v194_v31  ;;  %v218_v44 = vadd.f32 %v963_v38, %v195_v36  ;;  %v219_v45 = vadd.f32 %v966_v39, %v196_v28  ;;  %v220_v46 = vadd.f32 %v969_v40, %v197_v37 }
  0x9f   :  { %v248_v49 = vpop.permute.xlu1 %247  ;;  %v625_v37 = vperm.slane %v666_v22, 1 }
  0xa0   :  { %v259_v47 = vmul.f32 %v251_v52, %v248_v49  ;;  %v260_v48 = vmul.f32 %v252_v53, %v248_v49  ;;  %v261_v32 = vmul.f32 %v253_v54, %v248_v49  ;;  %v262_v38 = vmul.f32 %v254_v55, %v248_v49 }
  0xa1   :  { %v240_v39 = vadd.f32 %v236_v27, %v217_v43  ;;  %v241_v40 = vadd.f32 %v237_v29, %v218_v44  ;;  %v242_v50 = vadd.f32 %v238_v30, %v219_v45  ;;  %v243_v57 = vadd.f32 %v239_v25, %v220_v46  ;;  %v634_v44 = vld [vmem:[%s1061_s8] sm:$0x3] }
  0xa2   :  { %v610_v30 = vperm.slane %v602_v4, 1 }
  0xa3   :  { %v263_v52 = vadd.f32 %v259_v47, %v240_v39  ;;  %v264_v3 = vadd.f32 %v260_v48, %v241_v40  ;;  %v265_v7 = vadd.f32 %v261_v32, %v242_v50  ;;  %v266_v53 = vadd.f32 %v262_v38, %v243_v57 }
  0xa4   :  { %v636_v47 = vperm.slane %v634_v44, 0  ;;  %v637_v32 = vperm.slane %v634_v44, 1 }
  0xa5   :  { %v286_v12 = vadd.f32 %v282_v6, %v263_v52  ;;  %v287_v59 = vadd.f32 %v283_v33, %v264_v3  ;;  %v288_v54 = vadd.f32 %v284_v41, %v265_v7  ;;  %v289_v13 = vadd.f32 %v285_v42, %v266_v53 }
  0xa6   :  { %v655_v52 = vstv %s1053_s0 }
  0xa7   :  { %v300_v35 = vadd.f32 %v292_v58, %v286_v12  ;;  %v301_v55 = vadd.f32 %v293_v60, %v287_v59  ;;  %v302_v14 = vadd.f32 %v294_v61, %v288_v54  ;;  %v303_v19 = vadd.f32 %v295_v62, %v289_v13  ;;  %v693_v60 = vld [vmem:[#allocation3] ss:$0 sm:$0xff] }
  0xa9   :  { %v304_v15 = vmax.f32 %v300_v35, 0.0  ;;  %v305_v16 = vmax.f32 %v301_v55, 0.0  ;;  %v306_v17 = vmax.f32 %v302_v14, 0.0  ;;  %v307_v20 = vmax.f32 %v303_v19, 0.0 }
  0xab   :  { %458 = vmatmul.f32.vlgmr.msra.gmra.mxu0 %v304_v15  ;;  %478 = vmatmul.f32.vlgmr.msra.gmra.mxu1 %v305_v16 }
  0xac   :  { %498 = vmatmul.f32.vlgmr.msra.gmra.mxu2 %v306_v17  ;;  %518 = vmatmul.f32.vlgmr.msra.gmra.mxu3 %v307_v20 }
  0xb3   :  { %538 = vmatmul.f32.vlgmr.msrb.gmra.mxu0 %v304_v15  ;;  %558 = vmatmul.f32.vlgmr.msrb.gmra.mxu1 %v305_v16 }
  0xb4   :  { %578 = vmatmul.f32.vlgmr.msrb.gmra.mxu2 %v306_v17  ;;  %598 = vmatmul.f32.vlgmr.msrb.gmra.mxu3 %v307_v20 }
  0xd4   :  { %v606_v21 = vpop.permute.xlu0 %605  ;;  %v621_v11 = vpop.permute.xlu1 %620 }
  0xd5   :  { %v613_v56 = vmul.f32 %v609_v18, %v606_v21  ;;  %v628_v31 = vmul.f32 %v624_v10, %v621_v11  ;;  %v614_v33 = vmul.f32 %v610_v30, %v606_v21  ;;  %v629_v45 = vmul.f32 %v625_v37, %v621_v11 }
 0x128   :  { %v459_v51 = vpop.f32.mrf.mxu0  ;;  %v479_v8 = vpop.f32.mrf.mxu1 }
 0x129   :  { %v460_v2 = vadd.f32 %v459_v51, %v438_v0 }
 0x12b   :  { %v480_v5 = vadd.f32 %v479_v8, %v460_v2 }
 0x12f   :  { %v499_v23 = vpop.f32.mrf.mxu2  ;;  %v519_v9 = vpop.f32.mrf.mxu3 }
 0x130   :  { %v500_v24 = vadd.f32 %v499_v23, %v480_v5  ;;  %v539_v26 = vpop.f32.mrf.mxu0  ;;  %v559_v36 = vpop.f32.mrf.mxu1 }
 0x131   :  { %v540_v29 = vadd.f32 %v539_v26, %v439_v1 }
 0x132   :  { %v520_v27 = vadd.f32 %v519_v9, %v500_v24 }
 0x133   :  { %v560_v28 = vadd.f32 %v559_v36, %v540_v29 }
 0x134   :  { %v615_v25 = vadd.f32 %v613_v56, %v520_v27 }
 0x136   :  { %v630_v41 = vadd.f32 %v628_v31, %v615_v25 }
 0x137   :  { %v579_v6 = vpop.f32.mrf.mxu2  ;;  %v599_v43 = vpop.f32.mrf.mxu3 }
 0x138   :  { %v580_v42 = vadd.f32 %v579_v6, %v560_v28  ;;  %v632_v49 = vmax.f32 %v630_v41, 0.0 }
 0x13a   :  { %v600_v46 = vadd.f32 %v599_v43, %v580_v42  ;;  %v640_v39 = vmul.f32 %v636_v47, %v632_v49 }
 0x13c   :  { %v616_v34 = vadd.f32 %v614_v33, %v600_v46  ;;  %v643_v50 = vsel %vm642_vm0, %v640_v39, 0.0 }
 0x13e   :  { %v631_v48 = vadd.f32 %v629_v45, %v616_v34 }
 0x140   :  { %v633_v38 = vmax.f32 %v631_v48, 0.0 }
 0x142   :  { %v641_v40 = vmul.f32 %v637_v32, %v633_v38 }
 0x144   :  { %v644_v57 = vsel %vm642_vm0, %v641_v40, 0.0 }
 0x145   :  { %v645_v58 = vadd.f32 %v644_v57, %v643_v50 }
 0x147   :  { %646 = vadd.xlane.f32.xlu2 %v645_v58 }
 0x1ba   :  { %v647_v61 = vpop.xlane.xlu2 %646 }
 0x1bb   :  { %v652_v62 = vadd.f32 %v693_v60, %v647_v61 }
 0x1bd   :  { %694 = vtanh.f32 %v652_v62 }
 0x1c3   :  { %v695_v3 = vpop.eup %694 }
 0x1c4   :  { %v656_v7 = vmul.f32 %v695_v3, %v655_v52 }
 0x1c6   :  { %658 = vst.msk [vmem:[%s1063_s10] sm:$0x3] %vm657_vm1, %v656_v7 }
 0x1c7   :  { %663 = vsyncpa [#allocation5], 1 }
 0x1c8   :  { %664 = vsyncpa [#allocation7], 1 }
 0x1c9   :  { %665 = vsyncpa [#allocation10], 1 }

</bundles_post_ra>
